<compile_context>
chip_gen: v7x
topology: tpu7x:2x2x1
jax: 0.10.0
libtpu: 0.0.40
codegen_flags: <defaults>
</compile_context>

<pallas_src>
import functools

import jax
import jax.numpy as jnp
from jax import lax
from jax.experimental import pallas as pl
from jax.experimental.pallas import tpu as pltpu

# Static classifier configuration (mirrors __init__ args).
FEATURE_NORMALIZATION = 2.0   # p for torch.nn.functional.normalize; None -> skip
USE_SOFTMAX = True
TEMPERATURE = 1.0
EPS = 1e-12                   # torch F.normalize eps default
PAD_POISON = 1e30             # finite poison for padded-class ||p||^2

LANE = 128
SUBLANE = 8

SUPPORT_TILE_CAP = 512        # multiple of 128 (lane dim of the one-hot block)
QUERY_TILE_CAP = 512
VMEM_BUDGET_BYTES = 32 * 1024 * 1024   # working budget used to size tiles
VMEM_LIMIT_BYTES = 48 * 1024 * 1024    # explicit scoped limit (v7x headroom)


def _round_up(x, m):
    return (x + m - 1) // m * m


def _center_and_normalize(x, centering, p):
    """compute_features: backbone=Identity, then center, then F.normalize(p, dim=1)."""
    feat = x - centering  # broadcast (1, D) against (N, D)
    if p is None:
        return feat
    if p == 2.0:
        # x / max(||x||, eps)  ==  x * rsqrt(max(||x||^2, eps^2))  (EUP rsqrt)
        sumsq = jnp.sum(feat * feat, axis=-1, keepdims=True)
        return feat * lax.rsqrt(jnp.maximum(sumsq, EPS * EPS))
    # general-p fallback (rare)
    norm = jnp.power(
        jnp.sum(jnp.power(jnp.abs(feat), p), axis=-1, keepdims=True), 1.0 / p)
    return feat / jnp.maximum(norm, EPS)


# ---------------------------------------------------------------------------
# Kernel 1: process_support_set (gridded over support-sample tiles)
#   - center + normalize support features
#   - accumulate one-hot^T @ feats into a VMEM f32 scratch
#   - last step: scale by 1/count -> prototypes (bf16) and emit the
#     lane-dense ||p||^2 row with padded lanes poisoned.
# ---------------------------------------------------------------------------
def support_kernel(support_ref, onehot_t_ref, inv_count_ref, centering_ref,
                   proto_ref, proto_sq_ref, acc_ref, *, n_classes):
    k = pl.program_id(0)

    @pl.when(k == 0)
    def _init():
        acc_ref[...] = jnp.zeros_like(acc_ref)

    feat = _center_and_normalize(
        support_ref[...].astype(jnp.float32),
        centering_ref[...].astype(jnp.float32),
        FEATURE_NORMALIZATION,
    )
    # (C_pad, ts) bf16 @ (ts, D) bf16 -> f32 accumulate (MXU-native operands).
    acc_ref[...] += jnp.dot(onehot_t_ref[...], feat.astype(jnp.bfloat16),
                            preferred_element_type=jnp.float32)

    @pl.when(k == pl.num_programs(0) - 1)
    def _finalize():
        protos = acc_ref[...] * inv_count_ref[...]          # (C_pad, D) f32
        p_bf = protos.astype(proto_ref.dtype)               # bf16 prototypes
        proto_ref[...] = p_bf

        # ||p_c||^2 laid out lane-dense as (1, C_pad) via MXU (no XLU
        # transpose); computed from the bf16-rounded prototypes actually used
        # in the query kernel.
        pq = p_bf.astype(jnp.float32)
        ones_row = jnp.ones((1, pq.shape[1]), jnp.float32)
        p2 = lax.dot_general(ones_row, pq * pq, (((1,), (1,)), ((), ())),
                             preferred_element_type=jnp.float32)
        # One-time poison of padded-class lanes (finite, so no inf-inf NaNs):
        col = lax.broadcasted_iota(jnp.int32, p2.shape, 1)
        proto_sq_ref[...] = jnp.where(col < n_classes, p2, PAD_POISON)


# ---------------------------------------------------------------------------
# Kernel 2: forward(query_images), gridded over query-row tiles
#   - center + normalize query features
#   - logits = -cdist(query_feats, prototypes)  via 1 + ||p||^2 - 2 q.p
#     (||q||^2 == 1 after L2 normalization)
#   - softmax_if_specified(temperature)
# ---------------------------------------------------------------------------
def query_kernel(query_ref, proto_ref, proto_sq_ref, centering_ref, out_ref):
    q = _center_and_normalize(
        query_ref[...].astype(jnp.float32),
        centering_ref[...].astype(jnp.float32),
        FEATURE_NORMALIZATION,
    )
    p = proto_ref[...]                                       # (C_pad, D) bf16
    p2 = proto_sq_ref[...]                                   # (1, C_pad) f32

    # Contract the last (feature) dims directly — no transpose feeding MXU,
    # bf16 operands with f32 accumulation.
    qp = lax.dot_general(q.astype(jnp.bfloat16), p, (((1,), (1,)), ((), ())),
                         preferred_element_type=jnp.float32)  # (TQ, C_pad)

    if FEATURE_NORMALIZATION == 2.0:
        q2 = 1.0   # ||q||^2 == 1 after L2 normalization; skip the reduction.
    else:
        q2 = jnp.sum(q * q, axis=-1, keepdims=True)

    d2 = jnp.maximum(q2 + p2 - 2.0 * qp, 0.0)
    logits = -jnp.sqrt(d2)                                   # l2_distance_to_prototypes

    if USE_SOFTMAX:
        z = logits if TEMPERATURE == 1.0 else TEMPERATURE * logits
        z = z - jnp.max(z, axis=-1, keepdims=True)
        e = jnp.exp(z)
        # Exact divide on a (TQ, 1) column -> rows sum to 1 to f32 precision.
        logits = e / jnp.sum(e, axis=-1, keepdims=True)

    out_ref[...] = logits.astype(out_ref.dtype)


# ---------------------------------------------------------------------------
# Python wrappers
# ---------------------------------------------------------------------------
def process_support_set(support_features, support_labels, centering, n_classes):
    n_support, d = support_features.shape
    c_pad = _round_up(n_classes, LANE)

    # Support-sample tile: full (sublane-rounded) set if small, else a
    # 512-row tile (multiple of 128 -> legal lane dim of the one-hot block).
    if n_support <= SUPPORT_TILE_CAP:
        ts = _round_up(n_support, SUBLANE)
    else:
        ts = SUPPORT_TILE_CAP
    s_pad = _round_up(n_support, ts)

    if s_pad != n_support:
        support_features = jnp.pad(
            support_features, ((0, s_pad - n_support), (0, 0)))
        support_labels = jnp.pad(
            support_labels, (0, s_pad - n_support), constant_values=-1)

    # Pre-transposed one-hot (C_pad, S_pad) in bf16 (MXU-native) and
    # reciprocal class counts (C_pad, 1): no in-kernel transposes / divisions.
    class_ids = jnp.arange(c_pad, dtype=support_labels.dtype)
    match = support_labels[None, :] == class_ids[:, None]
    onehot_t = match.astype(jnp.bfloat16)
    counts = jnp.sum(match, axis=1, keepdims=True).astype(jnp.float32)
    inv_counts = jnp.where(counts > 0, 1.0 / jnp.maximum(counts, 1.0), 0.0)

    # NOTE: normalized support features are not emitted (unused by forward).
    protos, proto_sq = pl.pallas_call(
        functools.partial(support_kernel, n_classes=n_classes),
        out_shape=(
            jax.ShapeDtypeStruct((c_pad, d), jnp.bfloat16),
            jax.ShapeDtypeStruct((1, c_pad), jnp.float32),
        ),
        grid=(s_pad // ts,),
        in_specs=[
            pl.BlockSpec((ts, d), lambda k: (k, 0)),
            pl.BlockSpec((c_pad, ts), lambda k: (0, k)),
            pl.BlockSpec((c_pad, 1), lambda k: (0, 0)),
            pl.BlockSpec((1, d), lambda k: (0, 0)),
        ],
        out_specs=(
            pl.BlockSpec((c_pad, d), lambda k: (0, 0)),
            pl.BlockSpec((1, c_pad), lambda k: (0, 0)),
        ),
        scratch_shapes=[pltpu.VMEM((c_pad, d), jnp.float32)],
        compiler_params=pltpu.CompilerParams(
            dimension_semantics=("arbitrary",),      # reduction over samples
            vmem_limit_bytes=VMEM_LIMIT_BYTES,
        ),
    )(support_features, onehot_t, inv_counts, centering)
    return protos, proto_sq


def _query_tile_rows(n_query, d, c_pad):
    """Largest sublane-aligned query tile that fits the VMEM budget (cap 512)."""
    per_row = (2 * d + 2 * c_pad + d + c_pad) * 4      # dbl-buffered in/out + temps
    fixed = 2 * (c_pad * d * 2 + c_pad * 4 + d * 4)    # proto(bf16) / proto_sq / centering
    avail = max(VMEM_BUDGET_BYTES - fixed, per_row * SUBLANE)
    cap = max(SUBLANE, (avail // per_row) // SUBLANE * SUBLANE)
    cap = min(cap, QUERY_TILE_CAP)
    return min(cap, _round_up(n_query, SUBLANE))


def forward(query_features, prototypes, proto_sq, centering, n_classes):
    n_query, d = query_features.shape
    c_pad = proto_sq.shape[-1]

    tq = _query_tile_rows(n_query, d, c_pad)
    q_pad = _round_up(n_query, tq)
    if q_pad != n_query:
        query_features = jnp.pad(query_features, ((0, q_pad - n_query), (0, 0)))

    out = pl.pallas_call(
        query_kernel,
        out_shape=jax.ShapeDtypeStruct((q_pad, c_pad), jnp.float32),
        grid=(q_pad // tq,),
        in_specs=[
            pl.BlockSpec((tq, d), lambda i: (i, 0)),
            pl.BlockSpec((c_pad, d), lambda i: (0, 0)),
            pl.BlockSpec((1, c_pad), lambda i: (0, 0)),
            pl.BlockSpec((1, d), lambda i: (0, 0)),
        ],
        out_specs=pl.BlockSpec((tq, c_pad), lambda i: (i, 0)),
        compiler_params=pltpu.CompilerParams(
            dimension_semantics=("parallel",),
            vmem_limit_bytes=VMEM_LIMIT_BYTES,
        ),
    )(query_features, prototypes, proto_sq, centering)
    return out[:n_query, :n_classes]


# ---------------------------------------------------------------------------
# Pure-JAX reference (for correctness check)
# ---------------------------------------------------------------------------
def _reference(support, labels, query, centering, n_classes):
    def feats(x):
        f = x - centering
        n = jnp.sqrt(jnp.sum(f * f, axis=1, keepdims=True))
        return f / jnp.maximum(n, EPS)
    sf = feats(support)
    qf = feats(query)
    protos = jnp.stack([sf[labels == c].mean(axis=0) for c in range(n_classes)])
    d2 = (jnp.sum(qf * qf, 1, keepdims=True)
          + jnp.sum(protos * protos, 1)[None, :]
          - 2.0 * qf @ protos.T)
    logits = -jnp.sqrt(jnp.maximum(d2, 0.0))
    if USE_SOFTMAX:
        logits = jax.nn.softmax(TEMPERATURE * logits, axis=-1)
    return logits


if __name__ == "__main__":
    key = jax.random.PRNGKey(0)
    k_sup, k_qry, k_cen = jax.random.split(key, 3)

    n_classes = 4
    n_shot = 5
    n_support = n_classes * n_shot        # 20
    n_query = 8
    feature_dim = 32

    # backbone = Identity  => inputs are already (n, feature_dim) feature vectors
    support_images = jax.random.normal(k_sup, (n_support, feature_dim), jnp.float32)
    query_images = jax.random.normal(k_qry, (n_query, feature_dim), jnp.float32)
    support_labels = jnp.repeat(jnp.arange(n_classes, dtype=jnp.int32), n_shot)

    # feature_centering vector (shape (1, feature_dim), broadcast over samples)
    feature_centering = 0.1 * jax.random.normal(k_cen, (1, feature_dim), jnp.float32)

    prototypes, proto_sq = process_support_set(
        support_images, support_labels, feature_centering, n_classes
    )
    logits = forward(query_images, prototypes, proto_sq, feature_centering, n_classes)
    jax.block_until_ready((prototypes, proto_sq, logits))

    assert logits.shape == (n_query, n_classes)

    # softmax rows sum to 1 (exact divide => tight tolerance)
    row_sums = jnp.sum(logits, axis=-1)
    assert bool(jnp.all(jnp.abs(row_sums - 1.0) < 1e-5)), row_sums

    # match the pure-JAX prototypical reference (bf16 MXU operands => ~1e-3
    # logit-level rounding; probabilities stay well inside 5e-3)
    ref = _reference(support_images, support_labels, query_images,
                     feature_centering, n_classes)
    assert bool(jnp.all(jnp.abs(logits - ref) < 5e-3)), jnp.max(jnp.abs(logits - ref))

    print("KERNEL_OK")
</pallas_src>

<mosaic_0001>
module attributes {stable_mosaic.version = 11 : i64} {
  func.func @support_kernel(%arg0: i32, %arg1: memref<24x32xf32, #tpu.memory_space<vmem>>, %arg2: memref<128x24xbf16, #tpu.memory_space<vmem>>, %arg3: memref<128x1xf32, #tpu.memory_space<vmem>>, %arg4: memref<1x32xf32, #tpu.memory_space<vmem>>, %arg5: memref<128x32xbf16, #tpu.memory_space<vmem>>, %arg6: memref<1x128xf32, #tpu.memory_space<vmem>>, %arg7: memref<128x32xf32, #tpu.memory_space<vmem>>) attributes {dimension_semantics = [#tpu.dimension_semantics<arbitrary>], iteration_bounds = array<i64: 1>, scalar_prefetch = 0 : i64, scratch_operands = 1 : i64, tpu.core_type = #tpu.core_type<tc>, window_params = [{transform_indices = @transform_0, window_bounds = array<i64: 24, 32>}, {transform_indices = @transform_1, window_bounds = array<i64: 128, 24>}, {pipeline_mode = #tpu.pipeline_mode<synchronous>, transform_indices = @transform_2, window_bounds = array<i64: 128, 1>}, {pipeline_mode = #tpu.pipeline_mode<synchronous>, transform_indices = @transform_3, window_bounds = array<i64: 1, 32>}, {pipeline_mode = #tpu.pipeline_mode<synchronous>, transform_indices = @transform_4, window_bounds = array<i64: 128, 32>}, {pipeline_mode = #tpu.pipeline_mode<synchronous>, transform_indices = @transform_5, window_bounds = array<i64: 1, 128>}]} {
    %c0_i32 = arith.constant 0 : i32
    %0 = arith.cmpi eq, %arg0, %c0_i32 : i32
    %1 = arith.extui %0 : i1 to i32
    %c0_i32_0 = arith.constant 0 : i32
    %2 = arith.cmpi ne, %1, %c0_i32_0 : i32
    scf.if %2 {
      %cst_14 = arith.constant 0.000000e+00 : f32
      %24 = vector.broadcast %cst_14 : f32 to vector<128x32xf32>
      %c0_15 = arith.constant 0 : index
      %c0_16 = arith.constant 0 : index
      %25 = vector.load %arg7[%c0_15, %c0_16] : memref<128x32xf32, #tpu.memory_space<vmem>>, vector<128x32xf32>
      tpu.vector_store %arg7[%c0_15, %c0_16], %24 {strides = array<i32>} : memref<128x32xf32, #tpu.memory_space<vmem>>, vector<128x32xf32>,
    } else {
    }
    %c0 = arith.constant 0 : index
    %c0_1 = arith.constant 0 : index
    %3 = vector.load %arg1[%c0, %c0_1] : memref<24x32xf32, #tpu.memory_space<vmem>>, vector<24x32xf32>
    %c0_2 = arith.constant 0 : index
    %c0_3 = arith.constant 0 : index
    %4 = vector.load %arg4[%c0_2, %c0_3] : memref<1x32xf32, #tpu.memory_space<vmem>>, vector<1x32xf32>
    %5 = vector.broadcast %4 : vector<1x32xf32> to vector<24x32xf32>
    %6 = arith.subf %3, %5 : vector<24x32xf32>
    %7 = arith.mulf %6, %6 : vector<24x32xf32>
    %cst = arith.constant dense<0.000000e+00> : vector<24xf32>
    %8 = vector.multi_reduction <add>, %7, %cst [1] : vector<24x32xf32> to vector<24xf32>
    %9 = vector.shape_cast %8 : vector<24xf32> to vector<24x1xf32>
    %cst_4 = arith.constant 1.000000e-24 : f32
    %10 = vector.broadcast %cst_4 : f32 to vector<24x1xf32>
    %11 = arith.maximumf %9, %10 : vector<24x1xf32>
    %12 = math.rsqrt %11 : vector<24x1xf32>
    %13 = vector.broadcast %12 : vector<24x1xf32> to vector<24x32xf32>
    %14 = arith.mulf %6, %13 : vector<24x32xf32>
    %c0_5 = arith.constant 0 : index
    %c0_6 = arith.constant 0 : index
    %15 = vector.load %arg7[%c0_5, %c0_6] : memref<128x32xf32, #tpu.memory_space<vmem>>, vector<128x32xf32>
    %c0_7 = arith.constant 0 : index
    %c0_8 = arith.constant 0 : index
    %16 = vector.load %arg2[%c0_7, %c0_8] : memref<128x24xbf16, #tpu.memory_space<vmem>>, vector<128x24xbf16>
    %17 = arith.truncf %14 : vector<24x32xf32> to vector<24x32xbf16>
    %cst_9 = arith.constant dense<0.000000e+00> : vector<128x32xf32>
    %18 = tpu.matmul %16, %17, %cst_9 {dimension_numbers = #tpu.dot_dimension_numbers<[1], [0], [0], [1], [0, 0, 1, 1], [], []>} : vector<128x24xbf16>, vector<24x32xbf16>, vector<128x32xf32> -> vector<128x32xf32>
    %19 = arith.addf %15, %18 : vector<128x32xf32>
    %c0_10 = arith.constant 0 : index
    %c0_11 = arith.constant 0 : index
    %20 = vector.load %arg7[%c0_10, %c0_11] : memref<128x32xf32, #tpu.memory_space<vmem>>, vector<128x32xf32>
    tpu.vector_store %arg7[%c0_10, %c0_11], %19 {strides = array<i32>} : memref<128x32xf32, #tpu.memory_space<vmem>>, vector<128x32xf32>,
    %c0_i32_12 = arith.constant 0 : i32
    %21 = arith.cmpi eq, %arg0, %c0_i32_12 : i32
    %22 = arith.extui %21 : i1 to i32
    %c0_i32_13 = arith.constant 0 : i32
    %23 = arith.cmpi ne, %22, %c0_i32_13 : i32
    scf.if %23 {
      %c0_14 = arith.constant 0 : index
      %c0_15 = arith.constant 0 : index
      %24 = vector.load %arg7[%c0_14, %c0_15] : memref<128x32xf32, #tpu.memory_space<vmem>>, vector<128x32xf32>
      %c0_16 = arith.constant 0 : index
      %c0_17 = arith.constant 0 : index
      %25 = vector.load %arg3[%c0_16, %c0_17] : memref<128x1xf32, #tpu.memory_space<vmem>>, vector<128x1xf32>
      %26 = vector.broadcast %25 : vector<128x1xf32> to vector<128x32xf32>
      %27 = arith.mulf %24, %26 : vector<128x32xf32>
      %28 = arith.truncf %27 : vector<128x32xf32> to vector<128x32xbf16>
      %c0_18 = arith.constant 0 : index
      %c0_19 = arith.constant 0 : index
      %29 = vector.load %arg5[%c0_18, %c0_19] : memref<128x32xbf16, #tpu.memory_space<vmem>>, vector<128x32xbf16>
      tpu.vector_store %arg5[%c0_18, %c0_19], %28 {strides = array<i32>} : memref<128x32xbf16, #tpu.memory_space<vmem>>, vector<128x32xbf16>,
      %30 = arith.extf %28 : vector<128x32xbf16> to vector<128x32xf32>
      %cst_20 = arith.constant 1.000000e+00 : f32
      %31 = vector.broadcast %cst_20 : f32 to vector<1x32xf32>
      %32 = arith.mulf %30, %30 : vector<128x32xf32>
      %cst_21 = arith.constant dense<0.000000e+00> : vector<1x128xf32>
      %33 = tpu.matmul %31, %32, %cst_21 {dimension_numbers = #tpu.dot_dimension_numbers<[1], [1], [0], [0], [0, 0, 1, 0], [], []>} : vector<1x32xf32>, vector<128x32xf32>, vector<1x128xf32> -> vector<1x128xf32>
      %34 = tpu.iota {dimensions = array<i32: 1>} : vector<1x128xi32>
      %c4_i32 = arith.constant 4 : i32
      %35 = vector.broadcast %c4_i32 : i32 to vector<1x128xi32>
      %36 = arith.cmpi slt, %34, %35 : vector<1x128xi32>
      %cst_22 = arith.constant 1.000000e+30 : f32
      %37 = vector.broadcast %cst_22 : f32 to vector<1x128xf32>
      %38 = arith.select %36, %33, %37 : vector<1x128xi1>, vector<1x128xf32>
      %c0_23 = arith.constant 0 : index
      %c0_24 = arith.constant 0 : index
      %39 = vector.load %arg6[%c0_23, %c0_24] : memref<1x128xf32, #tpu.memory_space<vmem>>, vector<1x128xf32>
      tpu.vector_store %arg6[%c0_23, %c0_24], %38 {strides = array<i32>} : memref<1x128xf32, #tpu.memory_space<vmem>>, vector<1x128xf32>,
    } else {
    }
    return
  }
  func.func @transform_0(%arg0: i32) -> (i32, i32) {
    %c0_i32 = arith.constant 0 : i32
    %c0_i32_0 = arith.constant 0 : i32
    return %arg0, %c0_i32 : i32, i32
  }
  func.func @transform_1(%arg0: i32) -> (i32, i32) {
    %c0_i32 = arith.constant 0 : i32
    %c0_i32_0 = arith.constant 0 : i32
    return %c0_i32, %arg0 : i32, i32
  }
  func.func @transform_2(%arg0: i32) -> (i32, i32) {
    %c0_i32 = arith.constant 0 : i32
    %c0_i32_0 = arith.constant 0 : i32
    %c0_i32_1 = arith.constant 0 : i32
    return %c0_i32, %c0_i32_0 : i32, i32
  }
  func.func @transform_3(%arg0: i32) -> (i32, i32) {
    %c0_i32 = arith.constant 0 : i32
    %c0_i32_0 = arith.constant 0 : i32
    %c0_i32_1 = arith.constant 0 : i32
    return %c0_i32, %c0_i32_0 : i32, i32
  }
  func.func @transform_4(%arg0: i32) -> (i32, i32) {
    %c0_i32 = arith.constant 0 : i32
    %c0_i32_0 = arith.constant 0 : i32
    %c0_i32_1 = arith.constant 0 : i32
    return %c0_i32, %c0_i32_0 : i32, i32
  }
  func.func @transform_5(%arg0: i32) -> (i32, i32) {
    %c0_i32 = arith.constant 0 : i32
    %c0_i32_0 = arith.constant 0 : i32
    %c0_i32_1 = arith.constant 0 : i32
    return %c0_i32, %c0_i32_0 : i32, i32
  }
}

</mosaic_0001>

<bundles_post_ra>
// kernel: tpu_custom_call.1
= control target key start
LH: loop header
LB: loop body
LE: loop exit
PB: predicated region body
PF: predicated region fallthrough
CT: control target
= control target key end

     0   :  { %vm25_vm0 = vcmask 261120   ;;  %s1249_s0 = inlined_call_operand.vmem [shape: f32[24,32], index: 0, kind: input, shape index: {}]   ;;  %s1250_s1 = inlined_call_operand.vmem [shape: bf16[128,24], index: 1, kind: input, shape index: {}]   ;;  %s1251_s2 = inlined_call_operand.vmem [shape: f32[128,1], index: 2, kind: input, shape index: {}]   ;;  %s1252_s3 = inlined_call_operand.vmem [shape: f32[1,32], index: 3, kind: input, shape index: {}]   ;;  %s1253_s4 = inlined_call_operand.vmem [shape: bf16[128,32], index: 4, kind: output, shape index: {0}]   ;;  %s1254_s5 = inlined_call_operand.hbm [shape: f32[1,128], index: 5, kind: output, shape index: {1}]  }
   0x1   :  { %v42_v0 = vld [vmem:[%s1249_s0] sm:$0xff]  ;;  %v43_v2 = vld [vmem:[%s1249_s0 + $0x8] sm:$0xff]  ;;  %v44_v5 = vld [vmem:[%s1249_s0 + $0x10] sm:$0xff] }
   0x2   :  { %v697_v1 = vld [vmem:[%s1252_s3] ss:$0 sm:$0xff] }
   0x3   :  { %v969_v3 = vsub.f32 %v42_v0, %v697_v1  ;;  %v971_v4 = vsub.f32 %v43_v2, %v697_v1  ;;  %v976_v6 = vsub.f32 %v44_v5, %v697_v1 }
   0x5   :  { %v55_v7 = vmul.f32 %v969_v3, %v969_v3  ;;  %v56_v8 = vmul.f32 %v971_v4, %v971_v4  ;;  %v57_v9 = vmul.f32 %v976_v6, %v976_v6 }
   0x7   :  { %v59_v10 = vsel %vm25_vm0, %v55_v7, 0.0  ;;  %v65_v11 = vsel %vm25_vm0, %v57_v9, 0.0  ;;  %v62_v12 = vsel %vm25_vm0, %v56_v8, 0.0 }
   0x8   :  { %60 = vadd.xlane.f32.xlu0 %v59_v10  ;;  %66 = vadd.xlane.f32.xlu1 %v65_v11 }
   0x9   :  { %11 = vsyncpa [#allocation4], 0  ;;  %v886_v13 = vld [vmem:[%s1250_s1] sm:$0xff]   ;;  %vm151_vm1 = vcmask 195584   ;;  %v924_v15 = vmov 0   ;;  %v330_v16 = vld [vmem:[%s1251_s2 + $0x10] sm:$0xff] }
   0xa   :  { %794 = vmatprep.mubr.msk.bf16.mxu0 %vm151_vm1, %v886_v13  ;;  %v328_v14 = vld [vmem:[%s1251_s2] sm:$0xff]  ;;  %884 = vset.pattern.permute.xlu1 %v924_v15  ;;  %v329_v17 = vld [vmem:[%s1251_s2 + $0x8] sm:$0xff]  ;;  %v338_v18 = vld [vmem:[%s1251_s2 + $0x50] sm:$0xff]  ;;  %v925_v27 = vmov 0.0   ;;  %vm176_vm2 = vcmask 1043456   ;;  %v926_v54 = vmov 0.0|0.0  }
   0xb   :  { %885 = vset.pattern.permute.xlu0 %v924_v15  ;;  %v331_v19 = vld [vmem:[%s1251_s2 + $0x18] sm:$0xff]  ;;  %v340_v20 = vld [vmem:[%s1251_s2 + $0x60] sm:$0xff]  ;;  %v342_v22 = vld [vmem:[%s1251_s2 + $0x70] sm:$0xff]  ;;  %28 = vst.msk [vmem:[#allocation2 + $0x10] sm:$0xff] %vm25_vm0, %v925_v27  ;;  %845 = vmatprep.subr.bf16.mxu1 %v926_v54  ;;  %vm927_vm3 = vmmov 0   ;;  %vm504_vm4 = vcmask 257024  }
   0xc   :  { %63 = vadd.xlane.f32.xlu0 %v62_v12  ;;  %v332_v21 = vld [vmem:[%s1251_s2 + $0x20] sm:$0xff]  ;;  %v333_v23 = vld [vmem:[%s1251_s2 + $0x28] sm:$0xff]  ;;  %v334_v24 = vld [vmem:[%s1251_s2 + $0x30] sm:$0xff]  ;;  %26 = vst.msk [vmem:[#allocation2] sm:$0xff] %vm25_vm0, %v925_v27  ;;  %842 = vmatprep.mubr.msk.f32.mxu1 %vm927_vm3, %v925_v27 }
   0xd   :  { %v335_v25 = vld [vmem:[%s1251_s2 + $0x38] sm:$0xff]  ;;  %v336_v26 = vld [vmem:[%s1251_s2 + $0x40] sm:$0xff]  ;;  %27 = vst.msk [vmem:[#allocation2 + $0x8] sm:$0xff] %vm25_vm0, %v925_v27  ;;  %29 = vst.msk [vmem:[#allocation2 + $0x18] sm:$0xff] %vm25_vm0, %v925_v27 }
   0xe   :  { %30 = vst.msk [vmem:[#allocation2 + $0x20] sm:$0xff] %vm25_vm0, %v925_v27  ;;  %31 = vst.msk [vmem:[#allocation2 + $0x28] sm:$0xff] %vm25_vm0, %v925_v27  ;;  %v337_v28 = vld [vmem:[%s1251_s2 + $0x48] sm:$0xff]  ;;  %v339_v29 = vld [vmem:[%s1251_s2 + $0x58] sm:$0xff] }
   0xf   :  { %32 = vst.msk [vmem:[#allocation2 + $0x30] sm:$0xff] %vm25_vm0, %v925_v27  ;;  %33 = vst.msk [vmem:[#allocation2 + $0x38] sm:$0xff] %vm25_vm0, %v925_v27  ;;  %v341_v30 = vld [vmem:[%s1251_s2 + $0x68] sm:$0xff]  ;;  %v343_v31 = vld [vmem:[%s1251_s2 + $0x78] sm:$0xff] }
  0x10   :  { %34 = vst.msk [vmem:[#allocation2 + $0x40] sm:$0xff] %vm25_vm0, %v925_v27  ;;  %35 = vst.msk [vmem:[#allocation2 + $0x48] sm:$0xff] %vm25_vm0, %v925_v27  ;;  %v887_v47 = vld [vmem:[%s1250_s1 + $0x8] sm:$0xff]   ;;  %v888_v48 = vld [vmem:[%s1250_s1 + $0x10] sm:$0xff]  }
  0x11   :  { %36 = vst.msk [vmem:[#allocation2 + $0x50] sm:$0xff] %vm25_vm0, %v925_v27  ;;  %37 = vst.msk [vmem:[#allocation2 + $0x58] sm:$0xff] %vm25_vm0, %v925_v27  ;;  %v889_v49 = vld [vmem:[%s1250_s1 + $0x18] sm:$0xff]   ;;  %v890_v50 = vld [vmem:[%s1250_s1 + $0x20] sm:$0xff]  }
  0x12   :  { %38 = vst.msk [vmem:[#allocation2 + $0x60] sm:$0xff] %vm25_vm0, %v925_v27  ;;  %39 = vst.msk [vmem:[#allocation2 + $0x68] sm:$0xff] %vm25_vm0, %v925_v27  ;;  %v891_v51 = vld [vmem:[%s1250_s1 + $0x28] sm:$0xff]   ;;  %v892_v52 = vld [vmem:[%s1250_s1 + $0x30] sm:$0xff]  }
  0x13   :  { %40 = vst.msk [vmem:[#allocation2 + $0x70] sm:$0xff] %vm25_vm0, %v925_v27  ;;  %41 = vst.msk [vmem:[#allocation2 + $0x78] sm:$0xff] %vm25_vm0, %v925_v27  ;;  %v893_v53 = vld [vmem:[%s1250_s1 + $0x38] sm:$0xff]   ;;  %v79_v60 = vld [vmem:[#allocation2 + $0x10] sm:$0xff] }
  0x14   :  { %v77_v61 = vld [vmem:[#allocation2] sm:$0xff]  ;;  %v80_v0 = vld [vmem:[#allocation2 + $0x18] sm:$0xff]  ;;  %vm1149_vm5 = vmpackc.low %vm25_vm0, %vm25_vm0 }
  0x15   :  { %v81_v11 = vld [vmem:[#allocation2 + $0x20] sm:$0xff] }
  0x16   :  { %v83_v10 = vld [vmem:[#allocation2 + $0x30] sm:$0xff]  ;;  %v84_v13 = vld [vmem:[#allocation2 + $0x38] sm:$0xff] }
  0x19   :  { %346 = vperm.xlu1 %884, %v328_v14  }
  0x1d   :  { %356 = vperm.xlu1 %884, %v330_v16   ;;  %v82_v16 = vld [vmem:[#allocation2 + $0x28] sm:$0xff] }
  0x21   :  { %361 = vperm.xlu1 %884, %v331_v19  }
  0x22   :  { %351 = vperm.xlu0 %885, %v329_v17  }
  0x25   :  { %366 = vperm.xlu1 %884, %v332_v21  }
  0x26   :  { %396 = vperm.xlu0 %885, %v338_v18  }
  0x29   :  { %371 = vperm.xlu1 %884, %v333_v23  }
  0x2a   :  { %406 = vperm.xlu0 %885, %v340_v20  }
  0x2d   :  { %376 = vperm.xlu1 %884, %v334_v24  }
  0x2e   :  { %416 = vperm.xlu0 %885, %v342_v22  }
  0x31   :  { %381 = vperm.xlu1 %884, %v335_v25  }
  0x35   :  { %386 = vperm.xlu1 %884, %v336_v26  }
  0x39   :  { %391 = vperm.xlu1 %884, %v337_v28  }
  0x3d   :  { %401 = vperm.xlu1 %884, %v339_v29  }
  0x41   :  { %411 = vperm.xlu1 %884, %v341_v30  }
  0x45   :  { %421 = vperm.xlu1 %884, %v343_v31  }
  0x95   :  { %v61_v32 = vpop.xlane.xlu0 %60  ;;  %v67_v34 = vpop.xlane.xlu1 %66 }
  0x96   :  { %v68_v33 = vmax.f32 %v61_v32, 1e-24  ;;  %v70_v35 = vmax.f32 %v67_v34, 1e-24  ;;  %v87_v32 = vld [vmem:[#allocation2 + $0x50] sm:$0xff] }
  0x98   :  { %894 = vrsqrt.f32 %v70_v35  ;;  %v85_v35 = vld [vmem:[#allocation2 + $0x40] sm:$0xff] }
  0x99   :  { %v64_v36 = vpop.xlane.xlu0 %63  ;;  %896 = vrsqrt.f32 %v68_v33  ;;  %v347_v55 = vpop.permute.xlu1 %346 }
  0x9a   :  { %v69_v37 = vmax.f32 %v64_v36, 1e-24 }
  0x9c   :  { %898 = vrsqrt.f32 %v69_v37 }
  0x9d   :  { %v357_v56 = vpop.permute.xlu1 %356 }
  0xa1   :  { %v362_v57 = vpop.permute.xlu1 %361  ;;  %v352_v28 = vpop.permute.xlu0 %351 }
  0xa2   :  { %v895_v38 = vpop.eup %894 }
  0xa3   :  { %v897_v39 = vpop.eup %896  ;;  %v76_v40 = vmul.f32 %v895_v38, %v976_v6  ;;  %v88_v38 = vld [vmem:[#allocation2 + $0x58] sm:$0xff] }
  0xa4   :  { %v74_v42 = vmul.f32 %v897_v39, %v969_v3  ;;  %v78_v3 = vld [vmem:[#allocation2 + $0x8] sm:$0xff] }
  0xa5   :  { %v110_v45 = vpack.c.bf16 %v76_v40, %v76_v40  ;;  %v1104_v58 = vpop.permute.xlu1 %366 }
  0xa6   :  { %v899_v41 = vpop.eup %898 }
  0xa7   :  { %v75_v43 = vmul.f32 %v899_v41, %v971_v4  ;;  %v178_v46 = vsel %vm176_vm2, %v110_v45, 0 }
  0xa9   :  { %v109_v44 = vpack.c.bf16 %v75_v43, %v74_v42  ;;  %v1106_v59 = vpop.permute.xlu1 %371  ;;  %v86_v43 = vld [vmem:[#allocation2 + $0x48] sm:$0xff] }
  0xab   :  { %790 = vmatprep.subr.bf16.mxu0 %v109_v44 }
  0xac   :  { %791 = vmatpush3.bf16.msra.mxu0 %v109_v44 }
  0xad   :  { %877 = vmatprep.subr.msk.bf16.mxu0 %vm176_vm2, %v110_v45  ;;  %v1108_v62 = vpop.permute.xlu1 %376 }
  0xb0   :  { %793 = vmatpush3.bf16.msra.mxu0 %v178_v46 }
  0xb1   :  { %v1113_v9 = vpop.permute.xlu1 %381 }
  0xb3   :  { %795 = vmatmul.mubr.msk.bf16.vlgmr.msra.gmra.mrb[0].mxu0 %vm151_vm1, %v887_v47 }
  0xb4   :  { %798 = vmatprep.mubr.msk.bf16.mxu0 %vm151_vm1, %v888_v48 }
  0xb5   :  { %v1117_v24 = vpop.permute.xlu1 %386 }
  0xb9   :  { %v1134_v45 = vpop.permute.xlu1 %391 }
  0xbb   :  { %799 = vmatmul.mubr.msk.bf16.gmra.mrb[4].mxu0 %vm151_vm1, %v889_v49 }
  0xbc   :  { %802 = vmatprep.mubr.msk.bf16.mxu0 %vm151_vm1, %v890_v50 }
  0xc3   :  { %803 = vmatmul.mubr.msk.bf16.gmra.mrb[8].mxu0 %vm151_vm1, %v891_v51 }
  0xc4   :  { %806 = vmatprep.mubr.msk.bf16.mxu0 %vm151_vm1, %v892_v52 }
  0xcb   :  { %807 = vmatmul.mubr.msk.bf16.gmra.mrb[12].mxu0 %vm151_vm1, %v893_v53 }
 0x186   :  { %v796_v63 = vpop.f32.mrb[0].mxu0 }
 0x187   :  { %v279_v1 = vadd.f32 %v796_v63, %v79_v60  ;;  %v214_v2 = vpop.f32.mrb[1].mxu0 }
 0x188   :  { %v277_v4 = vadd.f32 %v214_v2, %v77_v61  ;;  %v797_v5 = vpop.f32.mrb[2].mxu0 }
 0x189   :  { %295 = vst.msk [vmem:[#allocation2 + $0x10] sm:$0xff] %vm25_vm0, %v279_v1  ;;  %v280_v6 = vadd.f32 %v797_v5, %v80_v0  ;;  %v217_v7 = vpop.f32.mrb[3].mxu0  ;;  %v397_v5 = vpop.permute.xlu0 %396 }
 0x18a   :  { %293 = vst.msk [vmem:[#allocation2] sm:$0xff] %vm25_vm0, %v277_v4  ;;  %v278_v8 = vadd.f32 %v217_v7, %v78_v3 }
 0x18b   :  { %296 = vst.msk [vmem:[#allocation2 + $0x18] sm:$0xff] %vm25_vm0, %v280_v6 }
 0x18c   :  { %294 = vst.msk [vmem:[#allocation2 + $0x8] sm:$0xff] %vm25_vm0, %v278_v8 }
 0x18e   :  { %v800_v12 = vpop.f32.mrb[4].mxu0 }
 0x18f   :  { %v283_v14 = vadd.f32 %v800_v12, %v83_v10  ;;  %v230_v15 = vpop.f32.mrb[5].mxu0  ;;  %v89_v10 = vld [vmem:[#allocation2 + $0x60] sm:$0xff]  ;;  %v402_v12 = vpop.permute.xlu1 %401 }
 0x190   :  { %v281_v17 = vadd.f32 %v230_v15, %v81_v11  ;;  %v801_v18 = vpop.f32.mrb[6].mxu0  ;;  %v314_v19 = vld [vmem:[#allocation2 + $0x10] sm:$0xff] }
 0x191   :  { %299 = vst.msk [vmem:[#allocation2 + $0x30] sm:$0xff] %vm25_vm0, %v283_v14  ;;  %v284_v20 = vadd.f32 %v801_v18, %v84_v13  ;;  %v233_v21 = vpop.f32.mrb[7].mxu0  ;;  %v312_v22 = vld [vmem:[#allocation2] sm:$0xff]  ;;  %v426_v23 = vmul.f32 %v357_v56, %v314_v19  ;;  %v92_v13 = vld [vmem:[#allocation2 + $0x78] sm:$0xff] }
 0x192   :  { %297 = vst.msk [vmem:[#allocation2 + $0x20] sm:$0xff] %vm25_vm0, %v281_v17  ;;  %v282_v25 = vadd.f32 %v233_v21, %v82_v16  ;;  %v424_v26 = vmul.f32 %v347_v55, %v312_v22  ;;  %v315_v27 = vld [vmem:[#allocation2 + $0x18] sm:$0xff]  ;;  %v90_v16 = vld [vmem:[#allocation2 + $0x68] sm:$0xff] }
 0x193   :  { %300 = vst.msk [vmem:[#allocation2 + $0x38] sm:$0xff] %vm25_vm0, %v284_v20  ;;  %v313_v29 = vld [vmem:[#allocation2 + $0x8] sm:$0xff]  ;;  %v427_v30 = vmul.f32 %v362_v57, %v315_v27  ;;  %v749_v31 = vpack.c.bf16 %v426_v23, %v426_v23 }
 0x194   :  { %298 = vst.msk [vmem:[#allocation2 + $0x28] sm:$0xff] %vm25_vm0, %v282_v25  ;;  %v425_v33 = vmul.f32 %v352_v28, %v313_v29  ;;  %v747_v34 = vpack.c.bf16 %v424_v26, %v424_v26  ;;  %v407_v28 = vpop.permute.xlu0 %406 }
 0x195   :  { %v750_v36 = vpack.c.bf16 %v427_v30, %v427_v30  ;;  %507 = vst.msk [vmem:[%s1253_s4 + $0x8] sm:$0xf] %vm504_vm4, %v749_v31  ;;  %v441_v44 = vpack.c.bf16 %v427_v30, %v426_v23 }
 0x196   :  { %v804_v37 = vpop.f32.mrb[8].mxu0  ;;  %v440_v39 = vpack.c.bf16 %v425_v33, %v424_v26  ;;  %v748_v40 = vpack.c.bf16 %v425_v33, %v425_v33  ;;  %505 = vst.msk [vmem:[%s1253_s4] sm:$0xf] %vm504_vm4, %v747_v34 }
 0x197   :  { %v287_v41 = vadd.f32 %v804_v37, %v87_v32  ;;  %v246_v42 = vpop.f32.mrb[9].mxu0  ;;  %508 = vst.msk [vmem:[%s1253_s4 + $0xc] sm:$0xf] %vm504_vm4, %v750_v36  ;;  %v523_v1 = vunpack.c.l.bf16 %v441_v44  ;;  %v524_v2 = vunpack.c.h.bf16 %v441_v44  ;;  %v412_v36 = vpop.permute.xlu1 %411 }
 0x198   :  { %v285_v46 = vadd.f32 %v246_v42, %v85_v35  ;;  %v805_v47 = vpop.f32.mrb[10].mxu0  ;;  %506 = vst.msk [vmem:[%s1253_s4 + $0x4] sm:$0xf] %vm504_vm4, %v748_v40  ;;  %v521_v48 = vunpack.c.l.bf16 %v440_v39  ;;  %v522_v49 = vunpack.c.h.bf16 %v440_v39  ;;  %v318_v50 = vld [vmem:[#allocation2 + $0x30] sm:$0xff] }
 0x199   :  { %303 = vst.msk [vmem:[#allocation2 + $0x50] sm:$0xff] %vm25_vm0, %v287_v41  ;;  %v288_v51 = vadd.f32 %v805_v47, %v88_v38  ;;  %v249_v52 = vpop.f32.mrb[11].mxu0  ;;  %v316_v53 = vld [vmem:[#allocation2 + $0x20] sm:$0xff]  ;;  %v1142_v55 = vmul.f32 %v1108_v62, %v318_v50  ;;  %v539_v17 = vmul.f32 %v523_v1, %v523_v1  ;;  %v540_v18 = vmul.f32 %v524_v2, %v524_v2 }
 0x19a   :  { %301 = vst.msk [vmem:[#allocation2 + $0x40] sm:$0xff] %vm25_vm0, %v285_v46  ;;  %v286_v56 = vadd.f32 %v249_v52, %v86_v43  ;;  %v537_v57 = vmul.f32 %v521_v48, %v521_v48  ;;  %v538_v60 = vmul.f32 %v522_v49, %v522_v49  ;;  %v428_v61 = vmul.f32 %v1104_v58, %v316_v53  ;;  %v319_v63 = vld [vmem:[#allocation2 + $0x38] sm:$0xff]  ;;  %v91_v58 = vld [vmem:[#allocation2 + $0x70] sm:$0xff]  ;;  %v417_v43 = vpop.permute.xlu0 %416 }
 0x19b   :  { %304 = vst.msk [vmem:[#allocation2 + $0x58] sm:$0xff] %vm25_vm0, %v288_v51  ;;  %v317_v62 = vld [vmem:[#allocation2 + $0x28] sm:$0xff]  ;;  %v431_v3 = vmul.f32 %v1113_v9, %v319_v63  ;;  %v753_v4 = vpack.c.bf16 %v1142_v55, %v1142_v55  ;;  %v850_v32 = vpack.c.bf16 %v540_v18, %v539_v17  ;;  %v422_v49 = vpop.permute.xlu1 %421 }
 0x19c   :  { %302 = vst.msk [vmem:[#allocation2 + $0x48] sm:$0xff] %vm25_vm0, %v286_v56  ;;  %v846_v6 = vpack.c.bf16 %v538_v60, %v537_v57  ;;  %v429_v7 = vmul.f32 %v1106_v59, %v317_v62  ;;  %v751_v8 = vpack.c.bf16 %v428_v61, %v428_v61 }
 0x19d   :  { %v754_v11 = vpack.c.bf16 %v431_v3, %v431_v3  ;;  %511 = vst.msk [vmem:[%s1253_s4 + $0x18] sm:$0xf] %vm504_vm4, %v753_v4  ;;  %v443_v42 = vpack.c.bf16 %v431_v3, %v1142_v55 }
 0x19e   :  { %v808_v9 = vpop.f32.mrb[12].mxu0  ;;  %848 = vmatpush3.bf16.xpose.msk.msra.mxu1 %vm1149_vm5, %v846_v6  ;;  %v752_v14 = vpack.c.bf16 %v429_v7, %v429_v7  ;;  %509 = vst.msk [vmem:[%s1253_s4 + $0x10] sm:$0xf] %vm504_vm4, %v751_v8  ;;  %v442_v21 = vpack.c.bf16 %v429_v7, %v428_v61 }
 0x19f   :  { %v291_v59 = vadd.f32 %v808_v9, %v91_v58  ;;  %v262_v15 = vpop.f32.mrb[13].mxu0  ;;  %849 = vmatprep.subr.bf16.mxu1 %v926_v54  ;;  %512 = vst.msk [vmem:[%s1253_s4 + $0x1c] sm:$0xf] %vm504_vm4, %v754_v11  ;;  %v527_v52 = vunpack.c.l.bf16 %v443_v42  ;;  %v528_v60 = vunpack.c.h.bf16 %v443_v42 }
 0x1a0   :  { %v289_v19 = vadd.f32 %v262_v15, %v89_v10  ;;  %v809_v20 = vpop.f32.mrb[14].mxu0  ;;  %510 = vst.msk [vmem:[%s1253_s4 + $0x14] sm:$0xf] %vm504_vm4, %v752_v14  ;;  %v322_v22 = vld [vmem:[#allocation2 + $0x50] sm:$0xff]  ;;  %v525_v37 = vunpack.c.l.bf16 %v442_v21  ;;  %v526_v38 = vunpack.c.h.bf16 %v442_v21 }
 0x1a1   :  { %307 = vst.msk [vmem:[#allocation2 + $0x70] sm:$0xff] %vm25_vm0, %v291_v59  ;;  %v292_v23 = vadd.f32 %v809_v20, %v92_v13  ;;  %v265_v25 = vpop.f32.mrb[15].mxu0  ;;  %v320_v26 = vld [vmem:[#allocation2 + $0x40] sm:$0xff]  ;;  %v434_v27 = vmul.f32 %v397_v5, %v322_v22  ;;  %v543_v62 = vmul.f32 %v527_v52, %v527_v52  ;;  %v544_v3 = vmul.f32 %v528_v60, %v528_v60 }
 0x1a2   :  { %305 = vst.msk [vmem:[#allocation2 + $0x60] sm:$0xff] %vm25_vm0, %v289_v19  ;;  %v290_v29 = vadd.f32 %v265_v25, %v90_v16  ;;  %v432_v30 = vmul.f32 %v1117_v24, %v320_v26  ;;  %v323_v31 = vld [vmem:[#allocation2 + $0x58] sm:$0xff]  ;;  %v541_v44 = vmul.f32 %v525_v37, %v525_v37 }
 0x1a3   :  { %308 = vst.msk [vmem:[#allocation2 + $0x78] sm:$0xff] %vm25_vm0, %v292_v23  ;;  %v321_v33 = vld [vmem:[#allocation2 + $0x48] sm:$0xff]  ;;  %v435_v34 = vmul.f32 %v402_v12, %v323_v31  ;;  %v757_v35 = vpack.c.bf16 %v434_v27, %v434_v27  ;;  %v858_v5 = vpack.c.bf16 %v544_v3, %v543_v62 }
 0x1a4   :  { %306 = vst.msk [vmem:[#allocation2 + $0x68] sm:$0xff] %vm25_vm0, %v290_v29  ;;  %v433_v39 = vmul.f32 %v1134_v45, %v321_v33  ;;  %v755_v40 = vpack.c.bf16 %v432_v30, %v432_v30  ;;  %v542_v45 = vmul.f32 %v526_v38, %v526_v38  ;;  %v674_v29 = vlaneseq }
 0x1a5   :  { %v758_v41 = vpack.c.bf16 %v435_v34, %v435_v34  ;;  %515 = vst.msk [vmem:[%s1253_s4 + $0x28] sm:$0xf] %vm504_vm4, %v757_v35  ;;  %v445_v10 = vpack.c.bf16 %v435_v34, %v434_v27 }
 0x1a6   :  { %852 = vmatpush3.bf16.xpose.msk.msra.mxu1 %vm1149_vm5, %v850_v32  ;;  %v756_v24 = vpack.c.bf16 %v433_v39, %v433_v39  ;;  %513 = vst.msk [vmem:[%s1253_s4 + $0x20] sm:$0xf] %vm504_vm4, %v755_v40  ;;  %v854_v57 = vpack.c.bf16 %v542_v45, %v541_v44  ;;  %v444_v4 = vpack.c.bf16 %v433_v39, %v432_v30  ;;  %v675_v30 = vand.u32 127, %v674_v29 }
 0x1a7   :  { %853 = vmatprep.subr.bf16.mxu1 %v926_v54  ;;  %516 = vst.msk [vmem:[%s1253_s4 + $0x2c] sm:$0xf] %vm504_vm4, %v758_v41  ;;  %v531_v12 = vunpack.c.l.bf16 %v445_v10  ;;  %v532_v9 = vunpack.c.h.bf16 %v445_v10 }
 0x1a8   :  { %514 = vst.msk [vmem:[%s1253_s4 + $0x24] sm:$0xf] %vm504_vm4, %v756_v24  ;;  %v326_v46 = vld [vmem:[#allocation2 + $0x70] sm:$0xff]  ;;  %v529_v58 = vunpack.c.l.bf16 %v444_v4  ;;  %v530_v6 = vunpack.c.h.bf16 %v444_v4  ;;  %vm676_vm6 = vcmp.lt.s32.totalorder %v675_v30, 4 }
 0x1a9   :  { %v324_v47 = vld [vmem:[#allocation2 + $0x60] sm:$0xff]  ;;  %v438_v48 = vmul.f32 %v417_v43, %v326_v46  ;;  %v547_v13 = vmul.f32 %v531_v12, %v531_v12  ;;  %v548_v14 = vmul.f32 %v532_v9, %v532_v9 }
 0x1aa   :  { %v436_v50 = vmul.f32 %v407_v28, %v324_v47  ;;  %v327_v51 = vld [vmem:[#allocation2 + $0x78] sm:$0xff]  ;;  %v545_v7 = vmul.f32 %v529_v58, %v529_v58  ;;  %v546_v8 = vmul.f32 %v530_v6, %v530_v6  ;;  %v928_v28 = vmov 1.0  }
 0x1ab   :  { %v325_v53 = vld [vmem:[#allocation2 + $0x68] sm:$0xff]  ;;  %v439_v55 = vmul.f32 %v422_v49, %v327_v51  ;;  %v761_v56 = vpack.c.bf16 %v438_v48, %v438_v48  ;;  %v866_v15 = vpack.c.bf16 %v548_v14, %v547_v13 }
 0x1ac   :  { %v437_v61 = vmul.f32 %v412_v36, %v325_v53  ;;  %v759_v63 = vpack.c.bf16 %v436_v50, %v436_v50  ;;  %v862_v11 = vpack.c.bf16 %v546_v8, %v545_v7 }
 0x1ad   :  { %v762_v1 = vpack.c.bf16 %v439_v55, %v439_v55  ;;  %519 = vst.msk [vmem:[%s1253_s4 + $0x38] sm:$0xf] %vm504_vm4, %v761_v56  ;;  %v447_v20 = vpack.c.bf16 %v439_v55, %v438_v48 }
 0x1ae   :  { %856 = vmatpush3.bf16.xpose.msk.msra.mxu1 %vm1149_vm5, %v854_v57  ;;  %v760_v2 = vpack.c.bf16 %v437_v61, %v437_v61  ;;  %517 = vst.msk [vmem:[%s1253_s4 + $0x30] sm:$0xf] %vm504_vm4, %v759_v63  ;;  %v446_v59 = vpack.c.bf16 %v437_v61, %v436_v50 }
 0x1af   :  { %857 = vmatprep.subr.bf16.mxu1 %v926_v54  ;;  %520 = vst.msk [vmem:[%s1253_s4 + $0x3c] sm:$0xf] %vm504_vm4, %v762_v1  ;;  %v535_v22 = vunpack.c.l.bf16 %v447_v20  ;;  %v536_v23 = vunpack.c.h.bf16 %v447_v20 }
 0x1b0   :  { %518 = vst.msk [vmem:[%s1253_s4 + $0x34] sm:$0xf] %vm504_vm4, %v760_v2  ;;  %v533_v16 = vunpack.c.l.bf16 %v446_v59  ;;  %v534_v17 = vunpack.c.h.bf16 %v446_v59  ;;  %s929_s4 = smov [#allocation3]  }
 0x1b1   :  { %v551_v25 = vmul.f32 %v535_v22, %v535_v22  ;;  %v552_v26 = vmul.f32 %v536_v23, %v536_v23  ;;  %s687_s21 = sshll.u32 %s929_s4, 4  ;;  %s688_s21 = int_to_ptr.vmem [resolvable:$true] %s687_s21 }
 0x1b2   :  { %v549_v18 = vmul.f32 %v533_v16, %v533_v16  ;;  %v550_v19 = vmul.f32 %v534_v17, %v534_v17  ;;  %s900_s22 = scalar_lea.vmem %s688_s21, 16  ;;  %s904_s23 = scalar_lea.vmem %s688_s21, 32 }
 0x1b3   :  { %v874_v27 = vpack.c.bf16 %v552_v26, %v551_v25  ;;  %p901_p0 = scmp.ne.s32.totalorder %s688_s21, %s900_s22  ;;  %p905_p1 = scmp.lt.s32.totalorder %s688_s21, %s688_s21 }
 0x1b4   :  { %v870_v21 = vpack.c.bf16 %v550_v19, %v549_v18  ;;  %p906_p2 = scmp.lt.s32.totalorder %s904_s23, %s900_s22 }
 0x1b6   :  { %860 = vmatpush3.bf16.xpose.msk.msra.mxu1 %vm1149_vm5, %v858_v5  ;;  %p907_p3 = por %p906_p2, %p905_p1 }
 0x1b7   :  { %861 = vmatprep.subr.bf16.mxu1 %v926_v54 }
 0x1b8   :  { %p908_p4 = pnand %p907_p3, %p901_p0 }
 0x1be   :  { %864 = vmatpush3.bf16.xpose.msk.msra.mxu1 %vm1149_vm5, %v862_v11 }
 0x1bf   :  { %865 = vmatprep.subr.bf16.mxu1 %v926_v54 }
 0x1c6   :  { %868 = vmatpush3.bf16.xpose.msk.msra.mxu1 %vm1149_vm5, %v866_v15 }
 0x1c7   :  { %869 = vmatprep.subr.bf16.mxu1 %v926_v54 }
 0x1ce   :  { %872 = vmatpush3.bf16.xpose.msk.msra.mxu1 %vm1149_vm5, %v870_v21 }
 0x1cf   :  { %873 = vmatprep.subr.bf16.mxu1 %v926_v54 }
 0x1d6   :  { %876 = vmatpush3.bf16.xpose.msk.msra.mxu1 %vm1149_vm5, %v874_v27 }
 0x1dd   :  { %843 = vmatmul.mubr.msk.f32.vlgmr.msra.gmra.mrb[0].mxu1 %vm25_vm0, %v928_v28 }
 0x2b0   :  { %v670_v31 = vpop.f32.mrb[0].mxu1 }
 0x2b1   :  { %v677_v32 = vsel %vm676_vm6, %v670_v31, 1e+30  ;;  %v844_v33 = vpop.f32.mrb[1].mxu1 }
 0x2b2   :  { %678 = vst [vmem:[#allocation3] sm:$0x1] %v677_v32 }
 0x2b3   :  { %911 = shalt.err (!%p908_p4)
}
 0x2b4   :  { %s912_s0 = scalar_lea.hbm %s1254_s5, 16 }
 0x2b5   :  { %p913_p5 = scmp.ne.s32.totalorder %s1254_s5, %s912_s0  ;;  %p916_p6 = scmp.lt.u32.totalorder %s912_s0, %s1254_s5 }
 0x2b7   :  { %p918_p7 = pnand %p916_p6, %p913_p5 }
 0x2b9   :  { %921 = shalt.err (!%p918_p7)
}
 0x2ba   :  { %690 = dma.vmem_to_hbm [thread:$0]  %s688_s21, 16, %s1254_s5, [#allocation4]  }
 0x2bb   :  { %922 = dma.done.wait [#allocation4], 16  }
 0x2bc   :  { %923 = vsyncadd [#allocation4], 4294967280 }
 0x2bd   :  { %696 = vsyncpa [#allocation4], 1 }

</bundles_post_ra>
